<compile_context>
chip_gen: v7x
topology: tpu7x:2x2x1
jax: 0.10.0
libtpu: 0.0.40
codegen_flags: <defaults>
</compile_context>

<pallas_src>
import functools

import jax
import jax.numpy as jnp
from jax.experimental import pallas as pl
from jax.experimental.pallas import tpu as pltpu

WIN = 9                                  # module default win=None -> [9, 9]
PAD = WIN // 2                           # 4
INV_WIN_SIZE = 1.0 / float(WIN * WIN)    # 1/81


def _ncc_kernel(i_ref, j_ref, br_ref, bc_ref, out_ref, *, bt):
    H = i_ref.shape[1]
    W = i_ref.shape[2]
    Br = br_ref[...]                     # (H, H) banded ones (row direction)
    Bc = bc_ref[...]                     # (W, W) banded ones (col direction)
    inv = jnp.float32(INV_WIN_SIZE)

    acc = jnp.zeros((H, W), jnp.float32)
    for b in range(bt):                  # static unroll over images in block
        I = i_ref[b].astype(jnp.float32)
        J = j_ref[b].astype(jnp.float32)

        def box(x):
            # 9x9 zero-padded 'same' box filter as two MXU matmuls.
            c = jnp.dot(x, Bc, preferred_element_type=jnp.float32)
            return jnp.dot(Br, c, preferred_element_type=jnp.float32)

        I_sum = box(I)
        J_sum = box(J)
        I2_sum = box(I * I)
        J2_sum = box(J * J)
        IJ_sum = box(I * J)

        cross = IJ_sum - I_sum * J_sum * inv
        I_var = I2_sum - I_sum * I_sum * inv
        J_var = J2_sum - J_sum * J_sum * inv
        acc = acc + cross * cross / (I_var * J_var + 1e-5)

    total = jnp.sum(acc)
    # Lane-dense (8,128) tile per grid step; wrapper reads element [g, 0, 0].
    out_ref[...] = jnp.full(out_ref.shape, total, jnp.float32)


def _band(n: int) -> jnp.ndarray:
    idx = jnp.arange(n)
    return (jnp.abs(idx[:, None] - idx[None, :]) <= PAD).astype(jnp.float32)


def ncc_loss(y_true, y_pred, *, batch_tile=None):
    """Pallas implementation of the `ncc` module forward: -mean(local NCC)."""
    B, C, H, W = y_true.shape
    assert C == 1, "local NCC with a [1,1,9,9] sum filter requires C == 1"

    it = y_true.reshape(B, H, W)
    jt = y_pred.reshape(B, H, W)

    if batch_tile is None:
        in_bytes = jnp.dtype(y_true.dtype).itemsize
        band_bytes = 2 * 2 * (H * H + W * W) * 4           # 2 bands, 2 buffers
        per_img = 2 * 2 * H * W * in_bytes + 14 * H * W * 4  # I/O blocks + temps
        budget = (24 << 20) - band_bytes
        batch_tile = max(1, min(B, 8, budget // per_img))
    Bt = int(batch_tile)

    nblk = (B + Bt - 1) // Bt
    Bp = nblk * Bt
    if Bp != B:
        # Zero-padded batch images contribute exactly 0 to sum(cc);
        # the denominator below uses the true B.
        pad = ((0, Bp - B), (0, 0), (0, 0))
        it = jnp.pad(it, pad)
        jt = jnp.pad(jt, pad)

    br = _band(H)
    bc = _band(W)

    kernel = functools.partial(_ncc_kernel, bt=Bt)

    out = pl.pallas_call(
        kernel,
        out_shape=jax.ShapeDtypeStruct((nblk, 8, 128), jnp.float32),
        grid_spec=pltpu.PrefetchScalarGridSpec(
            num_scalar_prefetch=0,
            grid=(nblk,),
            in_specs=[
                pl.BlockSpec((Bt, H, W), lambda g: (g, 0, 0)),
                pl.BlockSpec((Bt, H, W), lambda g: (g, 0, 0)),
                pl.BlockSpec((H, H), lambda g: (0, 0)),   # constant idx -> fetched once
                pl.BlockSpec((W, W), lambda g: (0, 0)),
            ],
            out_specs=pl.BlockSpec((1, 8, 128), lambda g: (g, 0, 0)),
        ),
        compiler_params=pltpu.CompilerParams(
            dimension_semantics=("parallel",),
            vmem_limit_bytes=32 * 1024 * 1024,
        ),
    )(it, jt, br, bc)

    denom = float(B * H * W)
    return -(jnp.sum(out[:, 0, 0]) / denom)


def ncc_ref(y_true, y_pred):
    """Pure-JAX reference (mirrors the PyTorch module) for validation."""
    I = y_true.astype(jnp.float32)
    J = y_pred.astype(jnp.float32)
    filt = jnp.ones((1, 1, WIN, WIN), jnp.float32)

    def conv(x):
        return jax.lax.conv_general_dilated(
            x, filt, window_strides=(1, 1),
            padding=[(PAD, PAD), (PAD, PAD)],
            dimension_numbers=("NCHW", "OIHW", "NCHW"),
            precision=jax.lax.Precision.HIGHEST)

    win_size = float(WIN * WIN)
    I2, J2, IJ = I * I, J * J, I * J
    I_sum, J_sum = conv(I), conv(J)
    I2_sum, J2_sum, IJ_sum = conv(I2), conv(J2), conv(IJ)
    u_I, u_J = I_sum / win_size, J_sum / win_size
    cross = IJ_sum - u_J * I_sum - u_I * J_sum + u_I * u_J * win_size
    I_var = I2_sum - 2 * u_I * I_sum + u_I * u_I * win_size
    J_var = J2_sum - 2 * u_J * J_sum + u_J * u_J * win_size
    cc = cross * cross / (I_var * J_var + 1e-5)
    return -jnp.mean(cc)


if __name__ == "__main__":
    key = jax.random.PRNGKey(0)
    k1, k2 = jax.random.split(key)
    # batch=2, channels=1 (required by the [1,1,9,9] sum filter), spatial 16x16.
    y_true = jax.random.normal(k1, (2, 1, 16, 16), dtype=jnp.float32)
    y_pred = jax.random.normal(k2, (2, 1, 16, 16), dtype=jnp.float32)

    loss = ncc_loss(y_true, y_pred)
    jax.block_until_ready(loss)

    ref = ncc_ref(y_true, y_pred)
    assert abs(float(loss) - float(ref)) < 1e-4, (float(loss), float(ref))

    print("KERNEL_OK")
</pallas_src>

<mosaic_0001>
module attributes {stable_mosaic.version = 11 : i64} {
  func.func @_ncc_kernel(%arg0: i32, %arg1: memref<2x16x16xf32, #tpu.memory_space<vmem>>, %arg2: memref<2x16x16xf32, #tpu.memory_space<vmem>>, %arg3: memref<16x16xf32, #tpu.memory_space<vmem>>, %arg4: memref<16x16xf32, #tpu.memory_space<vmem>>, %arg5: memref<1x8x128xf32, #tpu.memory_space<vmem>>) attributes {dimension_semantics = [#tpu.dimension_semantics<parallel>], iteration_bounds = array<i64: 1>, scalar_prefetch = 0 : i64, scratch_operands = 0 : i64, tpu.core_type = #tpu.core_type<tc>, window_params = [{transform_indices = @transform_0, window_bounds = array<i64: 2, 16, 16>}, {transform_indices = @transform_1, window_bounds = array<i64: 2, 16, 16>}, {pipeline_mode = #tpu.pipeline_mode<synchronous>, transform_indices = @transform_2, window_bounds = array<i64: 16, 16>}, {pipeline_mode = #tpu.pipeline_mode<synchronous>, transform_indices = @transform_3, window_bounds = array<i64: 16, 16>}, {transform_indices = @transform_4, window_bounds = array<i64: 1, 8, 128>}]} {
    %c0 = arith.constant 0 : index
    %c0_0 = arith.constant 0 : index
    %0 = vector.load %arg3[%c0, %c0_0] : memref<16x16xf32, #tpu.memory_space<vmem>>, vector<16x16xf32>
    %c0_1 = arith.constant 0 : index
    %c0_2 = arith.constant 0 : index
    %1 = vector.load %arg4[%c0_1, %c0_2] : memref<16x16xf32, #tpu.memory_space<vmem>>, vector<16x16xf32>
    %cst = arith.constant 0.000000e+00 : f32
    %2 = vector.broadcast %cst : f32 to vector<16x16xf32>
    %c0_3 = arith.constant 0 : index
    %c0_4 = arith.constant 0 : index
    %c0_5 = arith.constant 0 : index
    %3 = vector.load %arg1[%c0_3, %c0_4, %c0_5] : memref<2x16x16xf32, #tpu.memory_space<vmem>>, vector<1x16x16xf32>
    %4 = vector.shape_cast %3 : vector<1x16x16xf32> to vector<16x16xf32>
    %c0_6 = arith.constant 0 : index
    %c0_7 = arith.constant 0 : index
    %c0_8 = arith.constant 0 : index
    %5 = vector.load %arg2[%c0_6, %c0_7, %c0_8] : memref<2x16x16xf32, #tpu.memory_space<vmem>>, vector<1x16x16xf32>
    %6 = vector.shape_cast %5 : vector<1x16x16xf32> to vector<16x16xf32>
    %cst_9 = arith.constant dense<0.000000e+00> : vector<16x16xf32>
    %7 = tpu.matmul %4, %1, %cst_9 {dimension_numbers = #tpu.dot_dimension_numbers<[1], [0], [0], [1], [0, 0, 1, 1], [], []>} : vector<16x16xf32>, vector<16x16xf32>, vector<16x16xf32> -> vector<16x16xf32>
    %cst_10 = arith.constant dense<0.000000e+00> : vector<16x16xf32>
    %8 = tpu.matmul %0, %7, %cst_10 {dimension_numbers = #tpu.dot_dimension_numbers<[1], [0], [0], [1], [0, 0, 1, 1], [], []>} : vector<16x16xf32>, vector<16x16xf32>, vector<16x16xf32> -> vector<16x16xf32>
    %cst_11 = arith.constant dense<0.000000e+00> : vector<16x16xf32>
    %9 = tpu.matmul %6, %1, %cst_11 {dimension_numbers = #tpu.dot_dimension_numbers<[1], [0], [0], [1], [0, 0, 1, 1], [], []>} : vector<16x16xf32>, vector<16x16xf32>, vector<16x16xf32> -> vector<16x16xf32>
    %cst_12 = arith.constant dense<0.000000e+00> : vector<16x16xf32>
    %10 = tpu.matmul %0, %9, %cst_12 {dimension_numbers = #tpu.dot_dimension_numbers<[1], [0], [0], [1], [0, 0, 1, 1], [], []>} : vector<16x16xf32>, vector<16x16xf32>, vector<16x16xf32> -> vector<16x16xf32>
    %11 = arith.mulf %4, %4 : vector<16x16xf32>
    %cst_13 = arith.constant dense<0.000000e+00> : vector<16x16xf32>
    %12 = tpu.matmul %11, %1, %cst_13 {dimension_numbers = #tpu.dot_dimension_numbers<[1], [0], [0], [1], [0, 0, 1, 1], [], []>} : vector<16x16xf32>, vector<16x16xf32>, vector<16x16xf32> -> vector<16x16xf32>
    %cst_14 = arith.constant dense<0.000000e+00> : vector<16x16xf32>
    %13 = tpu.matmul %0, %12, %cst_14 {dimension_numbers = #tpu.dot_dimension_numbers<[1], [0], [0], [1], [0, 0, 1, 1], [], []>} : vector<16x16xf32>, vector<16x16xf32>, vector<16x16xf32> -> vector<16x16xf32>
    %14 = arith.mulf %6, %6 : vector<16x16xf32>
    %cst_15 = arith.constant dense<0.000000e+00> : vector<16x16xf32>
    %15 = tpu.matmul %14, %1, %cst_15 {dimension_numbers = #tpu.dot_dimension_numbers<[1], [0], [0], [1], [0, 0, 1, 1], [], []>} : vector<16x16xf32>, vector<16x16xf32>, vector<16x16xf32> -> vector<16x16xf32>
    %cst_16 = arith.constant dense<0.000000e+00> : vector<16x16xf32>
    %16 = tpu.matmul %0, %15, %cst_16 {dimension_numbers = #tpu.dot_dimension_numbers<[1], [0], [0], [1], [0, 0, 1, 1], [], []>} : vector<16x16xf32>, vector<16x16xf32>, vector<16x16xf32> -> vector<16x16xf32>
    %17 = arith.mulf %4, %6 : vector<16x16xf32>
    %cst_17 = arith.constant dense<0.000000e+00> : vector<16x16xf32>
    %18 = tpu.matmul %17, %1, %cst_17 {dimension_numbers = #tpu.dot_dimension_numbers<[1], [0], [0], [1], [0, 0, 1, 1], [], []>} : vector<16x16xf32>, vector<16x16xf32>, vector<16x16xf32> -> vector<16x16xf32>
    %cst_18 = arith.constant dense<0.000000e+00> : vector<16x16xf32>
    %19 = tpu.matmul %0, %18, %cst_18 {dimension_numbers = #tpu.dot_dimension_numbers<[1], [0], [0], [1], [0, 0, 1, 1], [], []>} : vector<16x16xf32>, vector<16x16xf32>, vector<16x16xf32> -> vector<16x16xf32>
    %20 = arith.mulf %8, %10 : vector<16x16xf32>
    %cst_19 = arith.constant 0.0123456791 : f32
    %21 = vector.broadcast %cst_19 : f32 to vector<16x16xf32>
    %22 = arith.mulf %20, %21 : vector<16x16xf32>
    %23 = arith.subf %19, %22 : vector<16x16xf32>
    %24 = arith.mulf %8, %8 : vector<16x16xf32>
    %cst_20 = arith.constant 0.0123456791 : f32
    %25 = vector.broadcast %cst_20 : f32 to vector<16x16xf32>
    %26 = arith.mulf %24, %25 : vector<16x16xf32>
    %27 = arith.subf %13, %26 : vector<16x16xf32>
    %28 = arith.mulf %10, %10 : vector<16x16xf32>
    %cst_21 = arith.constant 0.0123456791 : f32
    %29 = vector.broadcast %cst_21 : f32 to vector<16x16xf32>
    %30 = arith.mulf %28, %29 : vector<16x16xf32>
    %31 = arith.subf %16, %30 : vector<16x16xf32>
    %32 = arith.mulf %23, %23 : vector<16x16xf32>
    %33 = arith.mulf %27, %31 : vector<16x16xf32>
    %cst_22 = arith.constant 9.99999974E-6 : f32
    %34 = vector.broadcast %cst_22 : f32 to vector<16x16xf32>
    %35 = arith.addf %33, %34 : vector<16x16xf32>
    %36 = arith.divf %32, %35 : vector<16x16xf32>
    %37 = arith.addf %2, %36 : vector<16x16xf32>
    %c1 = arith.constant 1 : index
    %c0_23 = arith.constant 0 : index
    %c0_24 = arith.constant 0 : index
    %38 = vector.load %arg1[%c1, %c0_23, %c0_24] : memref<2x16x16xf32, #tpu.memory_space<vmem>>, vector<1x16x16xf32>
    %39 = vector.shape_cast %38 : vector<1x16x16xf32> to vector<16x16xf32>
    %c1_25 = arith.constant 1 : index
    %c0_26 = arith.constant 0 : index
    %c0_27 = arith.constant 0 : index
    %40 = vector.load %arg2[%c1_25, %c0_26, %c0_27] : memref<2x16x16xf32, #tpu.memory_space<vmem>>, vector<1x16x16xf32>
    %41 = vector.shape_cast %40 : vector<1x16x16xf32> to vector<16x16xf32>
    %cst_28 = arith.constant dense<0.000000e+00> : vector<16x16xf32>
    %42 = tpu.matmul %39, %1, %cst_28 {dimension_numbers = #tpu.dot_dimension_numbers<[1], [0], [0], [1], [0, 0, 1, 1], [], []>} : vector<16x16xf32>, vector<16x16xf32>, vector<16x16xf32> -> vector<16x16xf32>
    %cst_29 = arith.constant dense<0.000000e+00> : vector<16x16xf32>
    %43 = tpu.matmul %0, %42, %cst_29 {dimension_numbers = #tpu.dot_dimension_numbers<[1], [0], [0], [1], [0, 0, 1, 1], [], []>} : vector<16x16xf32>, vector<16x16xf32>, vector<16x16xf32> -> vector<16x16xf32>
    %cst_30 = arith.constant dense<0.000000e+00> : vector<16x16xf32>
    %44 = tpu.matmul %41, %1, %cst_30 {dimension_numbers = #tpu.dot_dimension_numbers<[1], [0], [0], [1], [0, 0, 1, 1], [], []>} : vector<16x16xf32>, vector<16x16xf32>, vector<16x16xf32> -> vector<16x16xf32>
    %cst_31 = arith.constant dense<0.000000e+00> : vector<16x16xf32>
    %45 = tpu.matmul %0, %44, %cst_31 {dimension_numbers = #tpu.dot_dimension_numbers<[1], [0], [0], [1], [0, 0, 1, 1], [], []>} : vector<16x16xf32>, vector<16x16xf32>, vector<16x16xf32> -> vector<16x16xf32>
    %46 = arith.mulf %39, %39 : vector<16x16xf32>
    %cst_32 = arith.constant dense<0.000000e+00> : vector<16x16xf32>
    %47 = tpu.matmul %46, %1, %cst_32 {dimension_numbers = #tpu.dot_dimension_numbers<[1], [0], [0], [1], [0, 0, 1, 1], [], []>} : vector<16x16xf32>, vector<16x16xf32>, vector<16x16xf32> -> vector<16x16xf32>
    %cst_33 = arith.constant dense<0.000000e+00> : vector<16x16xf32>
    %48 = tpu.matmul %0, %47, %cst_33 {dimension_numbers = #tpu.dot_dimension_numbers<[1], [0], [0], [1], [0, 0, 1, 1], [], []>} : vector<16x16xf32>, vector<16x16xf32>, vector<16x16xf32> -> vector<16x16xf32>
    %49 = arith.mulf %41, %41 : vector<16x16xf32>
    %cst_34 = arith.constant dense<0.000000e+00> : vector<16x16xf32>
    %50 = tpu.matmul %49, %1, %cst_34 {dimension_numbers = #tpu.dot_dimension_numbers<[1], [0], [0], [1], [0, 0, 1, 1], [], []>} : vector<16x16xf32>, vector<16x16xf32>, vector<16x16xf32> -> vector<16x16xf32>
    %cst_35 = arith.constant dense<0.000000e+00> : vector<16x16xf32>
    %51 = tpu.matmul %0, %50, %cst_35 {dimension_numbers = #tpu.dot_dimension_numbers<[1], [0], [0], [1], [0, 0, 1, 1], [], []>} : vector<16x16xf32>, vector<16x16xf32>, vector<16x16xf32> -> vector<16x16xf32>
    %52 = arith.mulf %39, %41 : vector<16x16xf32>
    %cst_36 = arith.constant dense<0.000000e+00> : vector<16x16xf32>
    %53 = tpu.matmul %52, %1, %cst_36 {dimension_numbers = #tpu.dot_dimension_numbers<[1], [0], [0], [1], [0, 0, 1, 1], [], []>} : vector<16x16xf32>, vector<16x16xf32>, vector<16x16xf32> -> vector<16x16xf32>
    %cst_37 = arith.constant dense<0.000000e+00> : vector<16x16xf32>
    %54 = tpu.matmul %0, %53, %cst_37 {dimension_numbers = #tpu.dot_dimension_numbers<[1], [0], [0], [1], [0, 0, 1, 1], [], []>} : vector<16x16xf32>, vector<16x16xf32>, vector<16x16xf32> -> vector<16x16xf32>
    %55 = arith.mulf %43, %45 : vector<16x16xf32>
    %cst_38 = arith.constant 0.0123456791 : f32
    %56 = vector.broadcast %cst_38 : f32 to vector<16x16xf32>
    %57 = arith.mulf %55, %56 : vector<16x16xf32>
    %58 = arith.subf %54, %57 : vector<16x16xf32>
    %59 = arith.mulf %43, %43 : vector<16x16xf32>
    %cst_39 = arith.constant 0.0123456791 : f32
    %60 = vector.broadcast %cst_39 : f32 to vector<16x16xf32>
    %61 = arith.mulf %59, %60 : vector<16x16xf32>
    %62 = arith.subf %48, %61 : vector<16x16xf32>
    %63 = arith.mulf %45, %45 : vector<16x16xf32>
    %cst_40 = arith.constant 0.0123456791 : f32
    %64 = vector.broadcast %cst_40 : f32 to vector<16x16xf32>
    %65 = arith.mulf %63, %64 : vector<16x16xf32>
    %66 = arith.subf %51, %65 : vector<16x16xf32>
    %67 = arith.mulf %58, %58 : vector<16x16xf32>
    %68 = arith.mulf %62, %66 : vector<16x16xf32>
    %cst_41 = arith.constant 9.99999974E-6 : f32
    %69 = vector.broadcast %cst_41 : f32 to vector<16x16xf32>
    %70 = arith.addf %68, %69 : vector<16x16xf32>
    %71 = arith.divf %67, %70 : vector<16x16xf32>
    %72 = arith.addf %37, %71 : vector<16x16xf32>
    %73 = vector.shape_cast %72 : vector<16x16xf32> to vector<1x16x16xf32>
    %cst_42 = arith.constant dense<0.000000e+00> : vector<1xf32>
    %74 = vector.multi_reduction <add>, %73, %cst_42 [1, 2] : vector<1x16x16xf32> to vector<1xf32>
    %75 = vector.shape_cast %74 : vector<1xf32> to vector<1x1x1xf32>
    %76 = vector.extract %75[0, 0, 0] : f32 from vector<1x1x1xf32>
    %77 = vector.broadcast %76 : f32 to vector<1x8x128xf32>
    %c0_43 = arith.constant 0 : index
    %c0_44 = arith.constant 0 : index
    %c0_45 = arith.constant 0 : index
    %78 = vector.load %arg5[%c0_43, %c0_44, %c0_45] : memref<1x8x128xf32, #tpu.memory_space<vmem>>, vector<1x8x128xf32>
    tpu.vector_store %arg5[%c0_43, %c0_44, %c0_45], %77 {strides = array<i32>} : memref<1x8x128xf32, #tpu.memory_space<vmem>>, vector<1x8x128xf32>,
    return
  }
  func.func @transform_0(%arg0: i32) -> (i32, i32, i32) {
    %c0_i32 = arith.constant 0 : i32
    %c0_i32_0 = arith.constant 0 : i32
    %c0_i32_1 = arith.constant 0 : i32
    return %arg0, %c0_i32, %c0_i32_0 : i32, i32, i32
  }
  func.func @transform_1(%arg0: i32) -> (i32, i32, i32) {
    %c0_i32 = arith.constant 0 : i32
    %c0_i32_0 = arith.constant 0 : i32
    %c0_i32_1 = arith.constant 0 : i32
    return %arg0, %c0_i32, %c0_i32_0 : i32, i32, i32
  }
  func.func @transform_2(%arg0: i32) -> (i32, i32) {
    %c0_i32 = arith.constant 0 : i32
    %c0_i32_0 = arith.constant 0 : i32
    %c0_i32_1 = arith.constant 0 : i32
    return %c0_i32, %c0_i32_0 : i32, i32
  }
  func.func @transform_3(%arg0: i32) -> (i32, i32) {
    %c0_i32 = arith.constant 0 : i32
    %c0_i32_0 = arith.constant 0 : i32
    %c0_i32_1 = arith.constant 0 : i32
    return %c0_i32, %c0_i32_0 : i32, i32
  }
  func.func @transform_4(%arg0: i32) -> (i32, i32, i32) {
    %c0_i32 = arith.constant 0 : i32
    %c0_i32_0 = arith.constant 0 : i32
    %c0_i32_1 = arith.constant 0 : i32
    return %arg0, %c0_i32, %c0_i32_0 : i32, i32, i32
  }
}

</mosaic_0001>

<bundles_post_ra>
// kernel: tpu_custom_call.1
= control target key start
LH: loop header
LB: loop body
LE: loop exit
PB: predicated region body
PF: predicated region fallthrough
CT: control target
= control target key end

     0   :  { %9 = vsyncpa [#allocation3], 0  ;;  %s2404_s0 = inlined_call_operand.hbm [shape: f32[2,16,16], index: 0, kind: input, shape index: {}]   ;;  %s2405_s1 = inlined_call_operand.hbm [shape: f32[2,16,16], index: 1, kind: input, shape index: {}]   ;;  %s2406_s2 = inlined_call_operand.hbm [shape: f32[16,16], index: 2, kind: input, shape index: {}]   ;;  %s2407_s3 = inlined_call_operand.hbm [shape: f32[16,16], index: 3, kind: input, shape index: {}]   ;;  %s2408_s4 = inlined_call_operand.hbm [shape: f32[1,8,128], index: 4, kind: output, shape index: {}]  }
   0x1   :  { %10 = vsyncpa [#allocation6], 0 }
   0x2   :  { %11 = vsyncpa [#allocation9], 0 }
   0x3   :  { %12 = vsyncpa [#allocation4], 0  ;;  %s2232_s15 = smov [#allocation5]   ;;  %s2233_s17 = smov [#allocation2]  }
   0x4   :  { %s30_s16 = sshll.u32 %s2232_s15, 4  ;;  %s18_s18 = sshll.u32 %s2233_s17, 4  ;;  %s31_s16 = int_to_ptr.vmem [resolvable:$true] %s30_s16  ;;  %s2264_s18 = int_to_ptr.vmem [resolvable:$true] %s18_s18 }
   0x5   :  { %s2114_s21 = scalar_lea.hbm %s2405_s1, 512 }
   0x6   :  { %p2115_p0 = scmp.ne.s32.totalorder %s2405_s1, %s2114_s21  ;;  %p2118_p1 = scmp.lt.u32.totalorder %s2114_s21, %s2405_s1 }
   0x8   :  { %p2120_p2 = pnand %p2118_p1, %p2115_p0 }
   0xa   :  { %2123 = shalt.err (!%p2120_p2)
}
   0xb   :  { %s2124_s26 = scalar_lea.vmem %s31_s16, 512  ;;  %p2129_p4 = scmp.lt.s32.totalorder %s31_s16, %s31_s16 }
   0xc   :  { %p2125_p3 = scmp.ne.s32.totalorder %s31_s16, %s2124_s26  ;;  %p2130_p5 = scmp.lt.s32.totalorder %s2124_s26, %s2124_s26 }
   0xe   :  { %p2131_p6 = por %p2130_p5, %p2129_p4 }
  0x10   :  { %p2132_p7 = pnand %p2131_p6, %p2125_p3 }
  0x12   :  { %2135 = shalt.err (!%p2132_p7)
}
  0x13   :  { %s2234_s27 = smov 128   ;;  %s2235_s28 = smov 8  }
  0x14   :  { %36 = dma.hbm_to_vmem [thread:$0]  %s2405_s1, 512, %s31_s16, [#allocation6], %s2234_s27, %s2234_s27, %s2235_s28  }
  0x15   :  { %s2136_s7 = scalar_lea.hbm %s2404_s0, 512 }
  0x16   :  { %p2137_p8 = scmp.ne.s32.totalorder %s2404_s0, %s2136_s7  ;;  %p2140_p9 = scmp.lt.u32.totalorder %s2136_s7, %s2404_s0 }
  0x18   :  { %p2142_p10 = pnand %p2140_p9, %p2137_p8 }
  0x1a   :  { %2145 = shalt.err (!%p2142_p10)
}
  0x1b   :  { %s2146_s12 = scalar_lea.vmem %s2264_s18, 512  ;;  %p2151_p12 = scmp.lt.s32.totalorder %s2264_s18, %s2264_s18 }
  0x1c   :  { %p2147_p11 = scmp.ne.s32.totalorder %s2264_s18, %s2146_s12  ;;  %p2152_p13 = scmp.lt.s32.totalorder %s2146_s12, %s2146_s12 }
  0x1e   :  { %p2153_p0 = por %p2152_p13, %p2151_p12 }
  0x20   :  { %p2154_p1 = pnand %p2153_p0, %p2147_p11 }
  0x22   :  { %2157 = shalt.err (!%p2154_p1)
}
  0x23   :  { %24 = dma.hbm_to_vmem [thread:$0]  %s2404_s0, 512, %s2264_s18, [#allocation3], %s2234_s27, %s2234_s27, %s2235_s28  }
  0x24   :  { %s2236_s14 = smov [#allocation7]   ;;  %s2237_s16 = smov [#allocation8]  }
  0x25   :  { %s42_s15 = sshll.u32 %s2236_s14, 4  ;;  %s54_s17 = sshll.u32 %s2237_s16, 4  ;;  %s43_s15 = int_to_ptr.vmem [resolvable:$true] %s42_s15  ;;  %s2301_s17 = int_to_ptr.vmem [resolvable:$true] %s54_s17 }
  0x26   :  { %s2158_s21 = scalar_lea.hbm %s2406_s2, 256 }
  0x27   :  { %p2159_p2 = scmp.ne.s32.totalorder %s2406_s2, %s2158_s21  ;;  %p2162_p3 = scmp.lt.u32.totalorder %s2158_s21, %s2406_s2 }
  0x29   :  { %p2164_p4 = pnand %p2162_p3, %p2159_p2 }
  0x2b   :  { %2167 = shalt.err (!%p2164_p4)
}
  0x2c   :  { %s2168_s0 = scalar_lea.vmem %s43_s15, 256  ;;  %p2173_p6 = scmp.lt.s32.totalorder %s43_s15, %s43_s15 }
  0x2d   :  { %p2169_p5 = scmp.ne.s32.totalorder %s43_s15, %s2168_s0  ;;  %p2174_p7 = scmp.lt.s32.totalorder %s2168_s0, %s2168_s0 }
  0x2f   :  { %p2175_p8 = por %p2174_p7, %p2173_p6 }
  0x31   :  { %p2176_p9 = pnand %p2175_p8, %p2169_p5 }
  0x33   :  { %2179 = shalt.err (!%p2176_p9)
}
  0x34   :  { %48 = dma.hbm_to_vmem [thread:$0]  %s2406_s2, 256, %s43_s15, [#allocation6], %s2234_s27, %s2234_s27, %s2235_s28  }
  0x35   :  { %s2180_s5 = scalar_lea.hbm %s2407_s3, 256 }
  0x36   :  { %p2181_p10 = scmp.ne.s32.totalorder %s2407_s3, %s2180_s5  ;;  %p2184_p11 = scmp.lt.u32.totalorder %s2180_s5, %s2407_s3 }
  0x38   :  { %p2186_p12 = pnand %p2184_p11, %p2181_p10 }
  0x3a   :  { %2189 = shalt.err (!%p2186_p12)
}
  0x3b   :  { %s2190_s10 = scalar_lea.vmem %s2301_s17, 256  ;;  %p2195_p0 = scmp.lt.s32.totalorder %s2301_s17, %s2301_s17 }
  0x3c   :  { %p2191_p13 = scmp.ne.s32.totalorder %s2301_s17, %s2190_s10  ;;  %p2196_p1 = scmp.lt.s32.totalorder %s2190_s10, %s2190_s10 }
  0x3e   :  { %p2197_p2 = por %p2196_p1, %p2195_p0 }
  0x40   :  { %p2198_p3 = pnand %p2197_p2, %p2191_p13 }
  0x42   :  { %2201 = shalt.err (!%p2198_p3)
}
  0x43   :  { %60 = dma.hbm_to_vmem [thread:$0]  %s2407_s3, 256, %s2301_s17, [#allocation9], %s2234_s27, %s2234_s27, %s2235_s28  }
  0x44   :  { %2224 = dma.done.wait [#allocation3], 512  }
  0x45   :  { %2225 = vsyncadd [#allocation3], 4294966784 }
  0x46   :  { %2226 = dma.done.wait [#allocation6], 768  }
  0x47   :  { %2227 = vsyncadd [#allocation6], 4294966528 }
  0x48   :  { %2228 = dma.done.wait [#allocation9], 256  }
  0x49   :  { %2229 = vsyncadd [#allocation9], 4294967040  ;;  %vm81_vm0 = vcmask 130048   ;;  %v75_v0 = vld [vmem:[#allocation8] sm:$0xff]  ;;  %v76_v1 = vld [vmem:[#allocation8 + $0x8] sm:$0xff]  ;;  %s2238_s3 = smov [#allocation10]  }
  0x4a   :  { %v77_v2 = vld [vmem:[#allocation2] sm:$0xff]  ;;  %v2017_v3 = vpack.c.bf16 %v76_v1, %v75_v0  ;;  %v78_v4 = vld [vmem:[#allocation2 + $0x8] sm:$0xff]  ;;  %v905_v13 = vld [vmem:[#allocation2 + $0x10] sm:$0xff]  ;;  %s1746_s27 = sshll.u32 %s2238_s3, 4  ;;  %s1747_s27 = int_to_ptr.vmem [resolvable:$true] %s1746_s27 }
  0x4b   :  { %1881 = vmatprep.mubr.msk.f32.mxu0 %vm81_vm0, %v77_v2  ;;  %v79_v5 = vld [vmem:[#allocation5] sm:$0xff]  ;;  %v400_v6 = vmul.f32 %v77_v2, %v77_v2  ;;  %v80_v7 = vld [vmem:[#allocation5 + $0x8] sm:$0xff]  ;;  %v401_v8 = vmul.f32 %v78_v4, %v78_v4  ;;  %v906_v14 = vld [vmem:[#allocation2 + $0x18] sm:$0xff]  ;;  %v1222_v16 = vmul.f32 %v905_v13, %v905_v13  ;;  %s2202_s12 = scalar_lea.vmem %s1747_s27, 128  ;;  %p2207_p5 = scmp.lt.s32.totalorder %s1747_s27, %s1747_s27 }
  0x4c   :  { %2018 = vmatprep.subr.bf16.mxu0 %v2017_v3  ;;  %v558_v9 = vmul.f32 %v79_v5, %v79_v5  ;;  %v559_v10 = vmul.f32 %v80_v7, %v80_v7  ;;  %v716_v11 = vmul.f32 %v79_v5, %v77_v2  ;;  %v717_v12 = vmul.f32 %v80_v7, %v78_v4  ;;  %v908_v15 = vld [vmem:[#allocation5 + $0x10] sm:$0xff]  ;;  %v909_v17 = vld [vmem:[#allocation5 + $0x18] sm:$0xff]  ;;  %v2358_v23 = vld [vmem:[#allocation7] sm:$0xff]  ;;  %p2203_p4 = scmp.ne.s32.totalorder %s1747_s27, %s2202_s12  ;;  %p2208_p6 = scmp.lt.s32.totalorder %s2202_s12, %s2202_s12 }
  0x4d   :  { %2020 = vmatpush3.bf16.msra.mxu0 %v2017_v3  ;;  %v1223_v18 = vmul.f32 %v906_v14, %v906_v14  ;;  %v1380_v19 = vmul.f32 %v908_v15, %v908_v15  ;;  %v1381_v20 = vmul.f32 %v909_v17, %v909_v17  ;;  %v1538_v21 = vmul.f32 %v908_v15, %v905_v13  ;;  %v74_v29 = vld [vmem:[#allocation7 + $0x8] sm:$0xff] }
  0x4e   :  { %2026 = vmatprep.subr.bf16.mxu0 %v2017_v3  ;;  %v1539_v22 = vmul.f32 %v909_v17, %v906_v14  ;;  %1888 = vmatprep.mubr.msk.f32.mxu1 %vm81_vm0, %v2358_v23  ;;  %p2209_p7 = por %p2208_p6, %p2207_p5 }
  0x50   :  { %1882 = vmatmul.mubr.msk.f32.vlgmr.msra.gmra.mrb[0].mxu0 %vm81_vm0, %v78_v4  ;;  %p2210_p8 = pnand %p2209_p7, %p2203_p4 }
  0x51   :  { %2028 = vmatpush3.bf16.msra.mxu0 %v2017_v3  ;;  %1895 = vmatprep.mubr.msk.f32.mxu0 %vm81_vm0, %v79_v5 }
  0x52   :  { %2034 = vmatprep.subr.bf16.mxu0 %v2017_v3 }
  0x54   :  { %1896 = vmatmul.mubr.msk.f32.vlgmr.msra.gmra.mrb[2].mxu0 %vm81_vm0, %v80_v7 }
  0x55   :  { %2036 = vmatpush3.bf16.msra.mxu0 %v2017_v3  ;;  %1909 = vmatprep.mubr.msk.f32.mxu0 %vm81_vm0, %v400_v6 }
  0x56   :  { %2042 = vmatprep.subr.bf16.mxu0 %v2017_v3 }
  0x58   :  { %1910 = vmatmul.mubr.msk.f32.vlgmr.msra.gmra.mrb[4].mxu0 %vm81_vm0, %v401_v8 }
  0x59   :  { %2044 = vmatpush3.bf16.msra.mxu0 %v2017_v3  ;;  %1923 = vmatprep.mubr.msk.f32.mxu0 %vm81_vm0, %v558_v9 }
  0x5a   :  { %2050 = vmatprep.subr.bf16.mxu0 %v2017_v3 }
  0x5c   :  { %1924 = vmatmul.mubr.msk.f32.vlgmr.msra.gmra.mrb[6].mxu0 %vm81_vm0, %v559_v10 }
  0x5d   :  { %2052 = vmatpush3.bf16.msra.mxu0 %v2017_v3  ;;  %1937 = vmatprep.mubr.msk.f32.mxu0 %vm81_vm0, %v716_v11 }
  0x5e   :  { %2058 = vmatprep.subr.bf16.mxu0 %v2017_v3 }
  0x60   :  { %1938 = vmatmul.mubr.msk.f32.vlgmr.msra.gmra.mrb[8].mxu0 %vm81_vm0, %v717_v12 }
  0x61   :  { %2060 = vmatpush3.bf16.msra.mxu0 %v2017_v3  ;;  %1951 = vmatprep.mubr.msk.f32.mxu0 %vm81_vm0, %v905_v13 }
  0x62   :  { %2066 = vmatprep.subr.bf16.mxu0 %v2017_v3 }
  0x64   :  { %1952 = vmatmul.mubr.msk.f32.vlgmr.msra.gmra.mrb[10].mxu0 %vm81_vm0, %v906_v14 }
  0x65   :  { %2068 = vmatpush3.bf16.msra.mxu0 %v2017_v3  ;;  %1965 = vmatprep.mubr.msk.f32.mxu0 %vm81_vm0, %v908_v15 }
  0x66   :  { %2074 = vmatprep.subr.bf16.mxu0 %v2017_v3 }
  0x68   :  { %1966 = vmatmul.mubr.msk.f32.vlgmr.msra.gmra.mrb[12].mxu0 %vm81_vm0, %v909_v17 }
  0x69   :  { %2076 = vmatpush3.bf16.msra.mxu0 %v2017_v3  ;;  %1979 = vmatprep.mubr.msk.f32.mxu0 %vm81_vm0, %v1222_v16 }
  0x6a   :  { %2082 = vmatprep.subr.bf16.mxu0 %v2017_v3 }
  0x6c   :  { %1980 = vmatmul.mubr.msk.f32.vlgmr.msra.gmra.mrb[14].mxu0 %vm81_vm0, %v1223_v18 }
  0x6d   :  { %2084 = vmatpush3.bf16.msra.mxu0 %v2017_v3  ;;  %1993 = vmatprep.mubr.msk.f32.mxu0 %vm81_vm0, %v1380_v19 }
  0x6e   :  { %2090 = vmatprep.subr.bf16.mxu0 %v2017_v3 }
  0x70   :  { %1994 = vmatmul.mubr.msk.f32.vlgmr.msra.gmra.mrb[16].mxu0 %vm81_vm0, %v1381_v20 }
  0x71   :  { %2092 = vmatpush3.bf16.msra.mxu0 %v2017_v3  ;;  %2007 = vmatprep.mubr.msk.f32.mxu0 %vm81_vm0, %v1538_v21 }
  0x74   :  { %2008 = vmatmul.mubr.msk.f32.vlgmr.msra.gmra.mrb[18].mxu0 %vm81_vm0, %v1539_v22 }
 0x123   :  { %v1883_v24 = vpop.f32.mrb[0].mxu0 }
 0x124   :  { %v154_v25 = vpop.f32.mrb[1].mxu0 }
 0x125   :  { %v2021_v26 = vpack.c.bf16 %v1883_v24, %v154_v25 }
 0x127   :  { %2022 = vmatprep.subr.bf16.mxu1 %v2021_v26  ;;  %v1897_v27 = vpop.f32.mrb[2].mxu0 }
 0x128   :  { %2024 = vmatpush3.bf16.msra.mxu1 %v2021_v26  ;;  %v316_v28 = vpop.f32.mrb[3].mxu0 }
 0x129   :  { %v2029_v30 = vpack.c.bf16 %v1897_v27, %v316_v28 }
 0x12b   :  { %1889 = vmatmul.mubr.msk.f32.vlgmr.msra.gmra.mrb[0].mxu1 %vm81_vm0, %v74_v29  ;;  %2030 = vmatprep.subr.bf16.mxu1 %v2029_v30  ;;  %v1911_v31 = vpop.f32.mrb[4].mxu0 }
 0x12c   :  { %2032 = vmatpush3.bf16.msra.mxu1 %v2029_v30  ;;  %v474_v32 = vpop.f32.mrb[5].mxu0  ;;  %1902 = vmatprep.mubr.msk.f32.mxu1 %vm81_vm0, %v2358_v23 }
 0x12d   :  { %v2037_v33 = vpack.c.bf16 %v1911_v31, %v474_v32 }
 0x12f   :  { %1903 = vmatmul.mubr.msk.f32.vlgmr.msra.gmra.mrb[2].mxu1 %vm81_vm0, %v74_v29  ;;  %2038 = vmatprep.subr.bf16.mxu1 %v2037_v33  ;;  %v1925_v34 = vpop.f32.mrb[6].mxu0 }
 0x130   :  { %2040 = vmatpush3.bf16.msra.mxu1 %v2037_v33  ;;  %v632_v35 = vpop.f32.mrb[7].mxu0  ;;  %1916 = vmatprep.mubr.msk.f32.mxu1 %vm81_vm0, %v2358_v23 }
 0x131   :  { %v2045_v36 = vpack.c.bf16 %v1925_v34, %v632_v35 }
 0x133   :  { %1917 = vmatmul.mubr.msk.f32.vlgmr.msra.gmra.mrb[4].mxu1 %vm81_vm0, %v74_v29  ;;  %2046 = vmatprep.subr.bf16.mxu1 %v2045_v36  ;;  %v1939_v37 = vpop.f32.mrb[8].mxu0 }
 0x134   :  { %2048 = vmatpush3.bf16.msra.mxu1 %v2045_v36  ;;  %v790_v38 = vpop.f32.mrb[9].mxu0  ;;  %1930 = vmatprep.mubr.msk.f32.mxu1 %vm81_vm0, %v2358_v23 }
 0x135   :  { %v2053_v39 = vpack.c.bf16 %v1939_v37, %v790_v38 }
 0x137   :  { %1931 = vmatmul.mubr.msk.f32.vlgmr.msra.gmra.mrb[6].mxu1 %vm81_vm0, %v74_v29  ;;  %2054 = vmatprep.subr.bf16.mxu1 %v2053_v39  ;;  %v1953_v40 = vpop.f32.mrb[10].mxu0 }
 0x138   :  { %2056 = vmatpush3.bf16.msra.mxu1 %v2053_v39  ;;  %v982_v41 = vpop.f32.mrb[11].mxu0  ;;  %1944 = vmatprep.mubr.msk.f32.mxu1 %vm81_vm0, %v2358_v23 }
 0x139   :  { %v2061_v42 = vpack.c.bf16 %v1953_v40, %v982_v41 }
 0x13b   :  { %1945 = vmatmul.mubr.msk.f32.vlgmr.msra.gmra.mrb[8].mxu1 %vm81_vm0, %v74_v29  ;;  %2062 = vmatprep.subr.bf16.mxu1 %v2061_v42  ;;  %v1967_v43 = vpop.f32.mrb[12].mxu0 }
 0x13c   :  { %2064 = vmatpush3.bf16.msra.mxu1 %v2061_v42  ;;  %v1138_v44 = vpop.f32.mrb[13].mxu0  ;;  %1958 = vmatprep.mubr.msk.f32.mxu1 %vm81_vm0, %v2358_v23 }
 0x13d   :  { %v2069_v45 = vpack.c.bf16 %v1967_v43, %v1138_v44 }
 0x13f   :  { %1959 = vmatmul.mubr.msk.f32.vlgmr.msra.gmra.mrb[10].mxu1 %vm81_vm0, %v74_v29  ;;  %2070 = vmatprep.subr.bf16.mxu1 %v2069_v45  ;;  %v1981_v46 = vpop.f32.mrb[14].mxu0 }
 0x140   :  { %2072 = vmatpush3.bf16.msra.mxu1 %v2069_v45  ;;  %v1296_v47 = vpop.f32.mrb[15].mxu0  ;;  %1972 = vmatprep.mubr.msk.f32.mxu1 %vm81_vm0, %v2358_v23 }
 0x141   :  { %v2077_v48 = vpack.c.bf16 %v1981_v46, %v1296_v47 }
 0x143   :  { %1973 = vmatmul.mubr.msk.f32.vlgmr.msra.gmra.mrb[12].mxu1 %vm81_vm0, %v74_v29  ;;  %2078 = vmatprep.subr.bf16.mxu1 %v2077_v48  ;;  %v1995_v49 = vpop.f32.mrb[16].mxu0 }
 0x144   :  { %2080 = vmatpush3.bf16.msra.mxu1 %v2077_v48  ;;  %v1454_v50 = vpop.f32.mrb[17].mxu0  ;;  %1986 = vmatprep.mubr.msk.f32.mxu1 %vm81_vm0, %v2358_v23 }
 0x145   :  { %v2085_v51 = vpack.c.bf16 %v1995_v49, %v1454_v50 }
 0x147   :  { %1987 = vmatmul.mubr.msk.f32.vlgmr.msra.gmra.mrb[14].mxu1 %vm81_vm0, %v74_v29  ;;  %2086 = vmatprep.subr.bf16.mxu1 %v2085_v51  ;;  %v2009_v52 = vpop.f32.mrb[18].mxu0 }
 0x148   :  { %2088 = vmatpush3.bf16.msra.mxu1 %v2085_v51  ;;  %v1612_v53 = vpop.f32.mrb[19].mxu0  ;;  %2000 = vmatprep.mubr.msk.f32.mxu1 %vm81_vm0, %v2358_v23 }
 0x149   :  { %v2093_v54 = vpack.c.bf16 %v2009_v52, %v1612_v53 }
 0x14b   :  { %2001 = vmatmul.mubr.msk.f32.vlgmr.msra.gmra.mrb[16].mxu1 %vm81_vm0, %v74_v29  ;;  %2094 = vmatprep.subr.bf16.mxu1 %v2093_v54 }
 0x14c   :  { %2096 = vmatpush3.bf16.msra.mxu1 %v2093_v54  ;;  %2014 = vmatprep.mubr.msk.f32.mxu1 %vm81_vm0, %v2358_v23 }
 0x14f   :  { %2015 = vmatmul.mubr.msk.f32.vlgmr.msra.gmra.mrb[18].mxu1 %vm81_vm0, %v74_v29 }
 0x1fe   :  { %v1890_v55 = vpop.f32.mrb[0].mxu1 }
 0x1ff   :  { %v235_v56 = vpop.f32.mrb[1].mxu1  ;;  %v881_v57 = vmul.f32 %v1890_v55, %v1890_v55 }
 0x200   :  { %v880_v58 = vmul.f32 %v235_v56, %v235_v56 }
 0x201   :  { %v883_v63 = vmul.f32 0.012345679, %v881_v57 }
 0x202   :  { %v1904_v59 = vpop.f32.mrb[2].mxu1  ;;  %v882_v1 = vmul.f32 0.012345679, %v880_v58 }
 0x203   :  { %v875_v60 = vmul.f32 %v1904_v59, %v1890_v55  ;;  %v391_v61 = vpop.f32.mrb[3].mxu1  ;;  %v887_v0 = vmul.f32 %v1904_v59, %v1904_v59 }
 0x204   :  { %v874_v62 = vmul.f32 %v391_v61, %v235_v56  ;;  %v886_v2 = vmul.f32 %v391_v61, %v391_v61 }
 0x205   :  { %v889_v7 = vmul.f32 0.012345679, %v887_v0  ;;  %v877_v13 = vmul.f32 0.012345679, %v875_v60 }
 0x206   :  { %v1918_v3 = vpop.f32.mrb[4].mxu1  ;;  %v888_v8 = vmul.f32 0.012345679, %v886_v2  ;;  %v876_v15 = vmul.f32 0.012345679, %v874_v62 }
 0x207   :  { %v885_v4 = vsub.f32 %v1918_v3, %v883_v63  ;;  %v549_v5 = vpop.f32.mrb[5].mxu1 }
 0x208   :  { %v884_v6 = vsub.f32 %v549_v5, %v882_v1 }
 0x20a   :  { %v1932_v9 = vpop.f32.mrb[6].mxu1 }
 0x20b   :  { %v891_v10 = vsub.f32 %v1932_v9, %v889_v7  ;;  %v707_v11 = vpop.f32.mrb[7].mxu1 }
 0x20c   :  { %v890_v12 = vsub.f32 %v707_v11, %v888_v8 }
 0x20d   :  { %v895_v14 = vmul.f32 %v891_v10, %v885_v4 }
 0x20e   :  { %v894_v16 = vmul.f32 %v890_v12, %v884_v6  ;;  %v1946_v17 = vpop.f32.mrb[8].mxu1 }
 0x20f   :  { %v897_v18 = vadd.f32 1e-05, %v895_v14  ;;  %v879_v19 = vsub.f32 %v1946_v17, %v877_v13  ;;  %v865_v20 = vpop.f32.mrb[9].mxu1 }
 0x210   :  { %v896_v21 = vadd.f32 1e-05, %v894_v16  ;;  %v878_v22 = vsub.f32 %v865_v20, %v876_v15 }
 0x211   :  { %2106 = vrcp.f32 %v897_v18  ;;  %v893_v33 = vmul.f32 %v879_v19, %v879_v19 }
 0x212   :  { %2108 = vrcp.f32 %v896_v21  ;;  %v1960_v23 = vpop.f32.mrb[10].mxu1  ;;  %v892_v38 = vmul.f32 %v878_v22, %v878_v22 }
 0x213   :  { %v1057_v24 = vpop.f32.mrb[11].mxu1  ;;  %v1703_v25 = vmul.f32 %v1960_v23, %v1960_v23 }
 0x214   :  { %v1702_v26 = vmul.f32 %v1057_v24, %v1057_v24 }
 0x215   :  { %v1705_v31 = vmul.f32 0.012345679, %v1703_v25 }
 0x216   :  { %v1974_v27 = vpop.f32.mrb[12].mxu1  ;;  %v1704_v34 = vmul.f32 0.012345679, %v1702_v26 }
 0x217   :  { %v1697_v28 = vmul.f32 %v1974_v27, %v1960_v23  ;;  %v1213_v29 = vpop.f32.mrb[13].mxu1  ;;  %v1709_v32 = vmul.f32 %v1974_v27, %v1974_v27 }
 0x218   :  { %v1696_v30 = vmul.f32 %v1213_v29, %v1057_v24  ;;  %v1708_v35 = vmul.f32 %v1213_v29, %v1213_v29 }
 0x219   :  { %v1711_v45 = vmul.f32 0.012345679, %v1709_v32  ;;  %v1699_v51 = vmul.f32 0.012345679, %v1697_v28 }
 0x21a   :  { %v1988_v36 = vpop.f32.mrb[14].mxu1  ;;  %v1710_v46 = vmul.f32 0.012345679, %v1708_v35  ;;  %v1698_v53 = vmul.f32 0.012345679, %v1696_v30 }
 0x21b   :  { %v2107_v37 = vpop.eup %2106  ;;  %v1707_v39 = vsub.f32 %v1988_v36, %v1705_v31  ;;  %v1371_v40 = vpop.f32.mrb[15].mxu1 }
 0x21c   :  { %v2109_v41 = vpop.eup %2108  ;;  %v901_v42 = vmul.f32 %v2107_v37, %v893_v33  ;;  %v1706_v43 = vsub.f32 %v1371_v40, %v1704_v34 }
 0x21d   :  { %v899_v44 = vmul.f32 %v2109_v41, %v892_v38 }
 0x21e   :  { %v2002_v47 = vpop.f32.mrb[16].mxu1 }
 0x21f   :  { %v1713_v48 = vsub.f32 %v2002_v47, %v1711_v45  ;;  %v1529_v49 = vpop.f32.mrb[17].mxu1 }
 0x220   :  { %v1712_v50 = vsub.f32 %v1529_v49, %v1710_v46 }
 0x221   :  { %v1717_v52 = vmul.f32 %v1713_v48, %v1707_v39 }
 0x222   :  { %v1716_v54 = vmul.f32 %v1712_v50, %v1706_v43  ;;  %v2016_v55 = vpop.f32.mrb[18].mxu1 }
 0x223   :  { %v1719_v56 = vadd.f32 1e-05, %v1717_v52  ;;  %v1701_v57 = vsub.f32 %v2016_v55, %v1699_v51  ;;  %v1687_v58 = vpop.f32.mrb[19].mxu1 }
 0x224   :  { %v1718_v59 = vadd.f32 1e-05, %v1716_v54  ;;  %v1700_v60 = vsub.f32 %v1687_v58, %v1698_v53 }
 0x225   :  { %2110 = vrcp.f32 %v1719_v56  ;;  %v1715_v61 = vmul.f32 %v1701_v57, %v1701_v57 }
 0x226   :  { %2112 = vrcp.f32 %v1718_v59  ;;  %v1714_v63 = vmul.f32 %v1700_v60, %v1700_v60 }
 0x22f   :  { %v2111_v62 = vpop.eup %2110 }
 0x230   :  { %v2113_v0 = vpop.eup %2112  ;;  %v1723_v1 = vmul.f32 %v2111_v62, %v1715_v61 }
 0x231   :  { %v1721_v2 = vmul.f32 %v2113_v0, %v1714_v63 }
 0x232   :  { %v1725_v3 = vadd.f32 %v1723_v1, %v901_v42 }
 0x233   :  { %v1724_v4 = vadd.f32 %v1721_v2, %v899_v44 }
 0x234   :  { %v1727_v5 = vsel %vm81_vm0, %v1725_v3, 0.0 }
 0x235   :  { %v1726_v6 = vsel %vm81_vm0, %v1724_v4, 0.0 }
 0x236   :  { %v1728_v7 = vadd.f32 %v1727_v5, %v1726_v6 }
 0x238   :  { %1729 = vadd.xlane.f32.xlu0 %v1728_v7 }
 0x2c5   :  { %v1730_v8 = vpop.xlane.xlu0 %1729 }
 0x2c6   :  { %v1731_v9 = vrot.slane %v1730_v8, 4 }
 0x2c8   :  { %v1732_v10 = vadd.f32 %v1731_v9, %v1730_v8 }
 0x2ca   :  { %v1733_v11 = vrot.slane %v1732_v10, 2 }
 0x2cc   :  { %v1734_v12 = vadd.f32 %v1733_v11, %v1732_v10 }
 0x2ce   :  { %v1735_v13 = vrot.slane %v1734_v12, 1 }
 0x2d0   :  { %v1736_v14 = vadd.f32 %v1735_v13, %v1734_v12 }
 0x2d2   :  { %2097 = vpush %v1736_v14 }
 0x303   :  { %s2098_s28 = spop %2097 }
 0x304   :  { %v1738_v15 = vstv %s2098_s28 }
 0x305   :  { %1739 = vst [vmem:[#allocation10] sm:$0xff] %v1738_v15 }
 0x306   :  { %2213 = shalt.err (!%p2210_p8)
}
 0x307   :  { %s2214_s14 = scalar_lea.hbm %s2408_s4, 128 }
 0x308   :  { %p2215_p9 = scmp.ne.s32.totalorder %s2408_s4, %s2214_s14  ;;  %p2218_p10 = scmp.lt.u32.totalorder %s2214_s14, %s2408_s4 }
 0x30a   :  { %p2220_p11 = pnand %p2218_p10, %p2215_p9 }
 0x30c   :  { %2223 = shalt.err (!%p2220_p11)
}
 0x30d   :  { %1749 = dma.vmem_to_hbm [thread:$0]  %s1747_s27, 128, %s2408_s4, [#allocation4]  }
 0x30e   :  { %2230 = dma.done.wait [#allocation4], 128  }
 0x30f   :  { %2231 = vsyncadd [#allocation4], 4294967168 }
 0x310   :  { %1753 = vsyncpa [#allocation3], 1 }
 0x311   :  { %1754 = vsyncpa [#allocation6], 1 }
 0x312   :  { %1755 = vsyncpa [#allocation9], 1 }
 0x313   :  { %1756 = vsyncpa [#allocation4], 1 }

</bundles_post_ra>
